<compile_context>
chip_gen: v7x
topology: tpu7x:2x2x1
jax: 0.10.0
libtpu: 0.0.40
codegen_flags: <defaults>
</compile_context>

<pallas_src>
import jax
import jax.numpy as jnp
from jax.experimental import pallas as pl
from jax.experimental.pallas import tpu as pltpu


def _round_up(x: int, m: int) -> int:
    return ((x + m - 1) // m) * m


def _make_multi_f1_kernel(n_valid: int, tile_n: int, num_classes: int):
    C = num_classes

    def kernel(logits_ref, labels_ref, out_ref, tp_ref, pred_ref, true_ref):
        pid = pl.program_id(0)

        # ---- init accumulators on the first tile -------------------------
        @pl.when(pid == 0)
        def _init():
            tp_ref[...] = jnp.zeros_like(tp_ref)
            pred_ref[...] = jnp.zeros_like(pred_ref)
            true_ref[...] = jnp.zeros_like(true_ref)

        logits = logits_ref[...]          # (TN, C) native dtype (bf16/f16/f32)
        labels = labels_ref[...]          # (TN, 1) int32

        row = jax.lax.broadcasted_iota(jnp.int32, (tile_n, C), 0)
        col = jax.lax.broadcasted_iota(jnp.int32, (tile_n, C), 1)
        valid = (pid * tile_n + row) < n_valid          # mask padded rows

        # argmax along the class (lane) axis, first-occurrence tie-break,
        # computed in the native dtype (compare/max only, no upcast).
        row_max = jnp.max(logits, axis=1, keepdims=True)              # (TN, 1)
        is_max = logits == row_max                                    # (TN, C)
        argmax = jnp.min(jnp.where(is_max, col, C), axis=1, keepdims=True)

        # boolean hit masks; fp/fn are derived in the epilogue
        pred_hit = (argmax == col) & valid                            # (TN, C)
        true_hit = (labels == col) & valid                            # (TN, C)
        tp_hit = pred_hit & (argmax == labels)                        # (TN, C)

        tp_ref[...] += jnp.sum(tp_hit.astype(jnp.float32), axis=0, keepdims=True)
        pred_ref[...] += jnp.sum(pred_hit.astype(jnp.float32), axis=0, keepdims=True)
        true_ref[...] += jnp.sum(true_hit.astype(jnp.float32), axis=0, keepdims=True)

        # ---- F1 epilogue, executed once on the last tile -----------------
        @pl.when(pid == pl.num_programs(0) - 1)
        def _finalize():
            eps = jnp.float32(1e-7)
            tp = tp_ref[...]
            fp = pred_ref[...] - tp
            fn = true_ref[...] - tp
            precision = tp / (tp + fp + eps)
            recall = tp / (tp + fn + eps)
            f1 = 2.0 * precision * recall / (precision + recall + eps)  # (1, C)
            out_ref[...] = jnp.sum(f1, axis=1, keepdims=True) / jnp.float32(C)

    return kernel


def multi_f1_score(logits: jax.Array, labels: jax.Array, num_classes: int,
                   *, tile_n: int = 512) -> jax.Array:
    """Macro F1 over `num_classes`. logits: (N, C) float (any dtype), labels: (N,) int."""
    assert logits.ndim == 2
    assert labels.ndim == 1
    N, C = logits.shape
    assert C == num_classes

    labels_2d = labels.astype(jnp.int32).reshape(N, 1)

    # tile size: multiple of 8 sublanes, capped so 2x double-buffered logits
    # tiles stay tiny relative to scoped VMEM on every generation
    tn = min(tile_n, _round_up(N, 8))
    n_pad = _round_up(N, tn)
    if n_pad != N:
        logits = jnp.pad(logits, ((0, n_pad - N), (0, 0)))
        labels_2d = jnp.pad(labels_2d, ((0, n_pad - N), (0, 0)), constant_values=-1)

    grid = (n_pad // tn,)
    kernel = _make_multi_f1_kernel(N, tn, C)

    cost = pl.CostEstimate(
        flops=10 * n_pad * C,
        transcendentals=0,
        bytes_accessed=n_pad * C * logits.dtype.itemsize + n_pad * 4 + 4,
    )

    out = pl.pallas_call(
        kernel,
        out_shape=jax.ShapeDtypeStruct((1, 1), jnp.float32),
        grid_spec=pltpu.PrefetchScalarGridSpec(
            num_scalar_prefetch=0,
            grid=grid,
            in_specs=[
                pl.BlockSpec((tn, C), lambda i: (i, 0)),   # logits tile
                pl.BlockSpec((tn, 1), lambda i: (i, 0)),   # labels tile
            ],
            out_specs=pl.BlockSpec((1, 1), lambda i: (0, 0)),
            scratch_shapes=[
                pltpu.VMEM((1, C), jnp.float32),   # tp
                pltpu.VMEM((1, C), jnp.float32),   # pred count
                pltpu.VMEM((1, C), jnp.float32),   # true count
            ],
        ),
        compiler_params=pltpu.CompilerParams(
            dimension_semantics=("arbitrary",),          # carried accumulator
            vmem_limit_bytes=32 * 1024 * 1024,           # safe on v5e/v6e/v7x
        ),
        cost_estimate=cost,
    )(logits, labels_2d)
    return out[0, 0]


def _reference_macro_f1(logits, labels, num_classes):
    pred_cls = jnp.argmax(logits, axis=1)
    f1s = []
    for c in range(num_classes):
        p = (pred_cls == c).astype(jnp.float32)
        t = (labels == c).astype(jnp.float32)
        tp = jnp.sum(p * t)
        fp = jnp.sum(p * (1 - t))
        fn = jnp.sum((1 - p) * t)
        prec = tp / (tp + fp + 1e-7)
        rec = tp / (tp + fn + 1e-7)
        f1s.append(2 * prec * rec / (prec + rec + 1e-7))
    return jnp.mean(jnp.stack(f1s))


if __name__ == "__main__":
    key = jax.random.PRNGKey(0)
    k1, k2, k3, k4 = jax.random.split(key, 4)

    # case 1: small, exactly tile-aligned
    num_classes = 4
    batch = 8
    logits = jax.random.normal(k1, (batch, num_classes), dtype=jnp.float32)
    labels = jax.random.randint(k2, (batch,), 0, num_classes, dtype=jnp.int32)

    f1 = multi_f1_score(logits, labels, num_classes)
    jax.block_until_ready(f1)
    ref = _reference_macro_f1(logits, labels, num_classes)
    assert jnp.allclose(f1, ref, atol=1e-6), (f1, ref)

    # case 2: non-aligned batch + multi-step grid (exercises mask + accumulator)
    num_classes2 = 5
    batch2 = 20
    logits2 = jax.random.normal(k3, (batch2, num_classes2), dtype=jnp.float32)
    labels2 = jax.random.randint(k4, (batch2,), 0, num_classes2, dtype=jnp.int32)

    f1b = multi_f1_score(logits2, labels2, num_classes2, tile_n=8)
    jax.block_until_ready(f1b)
    refb = _reference_macro_f1(logits2, labels2, num_classes2)
    assert jnp.allclose(f1b, refb, atol=1e-6), (f1b, refb)

    print("KERNEL_OK")
</pallas_src>

<mosaic_0001>
module attributes {stable_mosaic.version = 11 : i64} {
  func.func @kernel(%arg0: i32, %arg1: memref<8x4xf32, #tpu.memory_space<vmem>>, %arg2: memref<8x1xi32, #tpu.memory_space<vmem>>, %arg3: memref<1x1xf32, #tpu.memory_space<vmem>>, %arg4: memref<1x4xf32, #tpu.memory_space<vmem>>, %arg5: memref<1x4xf32, #tpu.memory_space<vmem>>, %arg6: memref<1x4xf32, #tpu.memory_space<vmem>>) attributes {dimension_semantics = [#tpu.dimension_semantics<arbitrary>], iteration_bounds = array<i64: 1>, scalar_prefetch = 0 : i64, scratch_operands = 3 : i64, tpu.core_type = #tpu.core_type<tc>, window_params = [{transform_indices = @transform_0, window_bounds = array<i64: 8, 4>}, {transform_indices = @transform_1, window_bounds = array<i64: 8, 1>}, {pipeline_mode = #tpu.pipeline_mode<synchronous>, transform_indices = @transform_2, window_bounds = array<i64: 1, 1>}]} {
    %c0_i32 = arith.constant 0 : i32
    %0 = arith.cmpi eq, %arg0, %c0_i32 : i32
    %1 = arith.extui %0 : i1 to i32
    %c0_i32_0 = arith.constant 0 : i32
    %2 = arith.cmpi ne, %1, %c0_i32_0 : i32
    scf.if %2 {
      %cst_23 = arith.constant 0.000000e+00 : f32
      %53 = vector.broadcast %cst_23 : f32 to vector<1x4xf32>
      %c0_24 = arith.constant 0 : index
      %c0_25 = arith.constant 0 : index
      %54 = vector.load %arg4[%c0_24, %c0_25] : memref<1x4xf32, #tpu.memory_space<vmem>>, vector<1x4xf32>
      tpu.vector_store %arg4[%c0_24, %c0_25], %53 {strides = array<i32>} : memref<1x4xf32, #tpu.memory_space<vmem>>, vector<1x4xf32>,
      %cst_26 = arith.constant 0.000000e+00 : f32
      %55 = vector.broadcast %cst_26 : f32 to vector<1x4xf32>
      %c0_27 = arith.constant 0 : index
      %c0_28 = arith.constant 0 : index
      %56 = vector.load %arg5[%c0_27, %c0_28] : memref<1x4xf32, #tpu.memory_space<vmem>>, vector<1x4xf32>
      tpu.vector_store %arg5[%c0_27, %c0_28], %55 {strides = array<i32>} : memref<1x4xf32, #tpu.memory_space<vmem>>, vector<1x4xf32>,
      %cst_29 = arith.constant 0.000000e+00 : f32
      %57 = vector.broadcast %cst_29 : f32 to vector<1x4xf32>
      %c0_30 = arith.constant 0 : index
      %c0_31 = arith.constant 0 : index
      %58 = vector.load %arg6[%c0_30, %c0_31] : memref<1x4xf32, #tpu.memory_space<vmem>>, vector<1x4xf32>
      tpu.vector_store %arg6[%c0_30, %c0_31], %57 {strides = array<i32>} : memref<1x4xf32, #tpu.memory_space<vmem>>, vector<1x4xf32>,
    } else {
    }
    %c0 = arith.constant 0 : index
    %c0_1 = arith.constant 0 : index
    %3 = vector.load %arg1[%c0, %c0_1] : memref<8x4xf32, #tpu.memory_space<vmem>>, vector<8x4xf32>
    %c0_2 = arith.constant 0 : index
    %c0_3 = arith.constant 0 : index
    %4 = vector.load %arg2[%c0_2, %c0_3] : memref<8x1xi32, #tpu.memory_space<vmem>>, vector<8x1xi32>
    %5 = tpu.iota {dimensions = array<i32: 0>} : vector<8x4xi32>
    %6 = tpu.iota {dimensions = array<i32: 1>} : vector<8x4xi32>
    %c8_i32 = arith.constant 8 : i32
    %7 = arith.muli %arg0, %c8_i32 : i32
    %8 = vector.broadcast %7 : i32 to vector<8x4xi32>
    %9 = arith.addi %8, %5 : vector<8x4xi32>
    %c8_i32_4 = arith.constant 8 : i32
    %10 = vector.broadcast %c8_i32_4 : i32 to vector<8x4xi32>
    %11 = arith.cmpi slt, %9, %10 : vector<8x4xi32>
    %cst = arith.constant dense<0xFF800000> : vector<8xf32>
    %12 = vector.multi_reduction <maximumf>, %3, %cst [1] : vector<8x4xf32> to vector<8xf32>
    %13 = vector.shape_cast %12 : vector<8xf32> to vector<8x1xf32>
    %14 = vector.broadcast %13 : vector<8x1xf32> to vector<8x4xf32>
    %15 = arith.cmpf oeq, %3, %14 : vector<8x4xf32>
    %c4_i32 = arith.constant 4 : i32
    %16 = vector.broadcast %c4_i32 : i32 to vector<8x4xi32>
    %17 = arith.select %15, %6, %16 : vector<8x4xi1>, vector<8x4xi32>
    %cst_5 = arith.constant dense<2147483647> : vector<8xi32>
    %18 = vector.multi_reduction <minsi>, %17, %cst_5 [1] : vector<8x4xi32> to vector<8xi32>
    %19 = vector.shape_cast %18 : vector<8xi32> to vector<8x1xi32>
    %20 = vector.broadcast %19 : vector<8x1xi32> to vector<8x4xi32>
    %21 = arith.cmpi eq, %20, %6 : vector<8x4xi32>
    %22 = arith.andi %21, %11 : vector<8x4xi1>
    %23 = vector.broadcast %4 : vector<8x1xi32> to vector<8x4xi32>
    %24 = arith.cmpi eq, %23, %6 : vector<8x4xi32>
    %25 = arith.andi %24, %11 : vector<8x4xi1>
    %26 = arith.cmpi eq, %19, %4 : vector<8x1xi32>
    %27 = vector.broadcast %26 : vector<8x1xi1> to vector<8x4xi1>
    %28 = arith.andi %22, %27 : vector<8x4xi1>
    %c0_6 = arith.constant 0 : index
    %c0_7 = arith.constant 0 : index
    %29 = vector.load %arg4[%c0_6, %c0_7] : memref<1x4xf32, #tpu.memory_space<vmem>>, vector<1x4xf32>
    %30 = arith.extui %28 : vector<8x4xi1> to vector<8x4xi32>
    %31 = arith.sitofp %30 : vector<8x4xi32> to vector<8x4xf32>
    %cst_8 = arith.constant dense<0.000000e+00> : vector<4xf32>
    %32 = vector.multi_reduction <add>, %31, %cst_8 [0] : vector<8x4xf32> to vector<4xf32>
    %33 = vector.shape_cast %32 : vector<4xf32> to vector<1x4xf32>
    %34 = arith.addf %29, %33 : vector<1x4xf32>
    %c0_9 = arith.constant 0 : index
    %c0_10 = arith.constant 0 : index
    %35 = vector.load %arg4[%c0_9, %c0_10] : memref<1x4xf32, #tpu.memory_space<vmem>>, vector<1x4xf32>
    tpu.vector_store %arg4[%c0_9, %c0_10], %34 {strides = array<i32>} : memref<1x4xf32, #tpu.memory_space<vmem>>, vector<1x4xf32>,
    %c0_11 = arith.constant 0 : index
    %c0_12 = arith.constant 0 : index
    %36 = vector.load %arg5[%c0_11, %c0_12] : memref<1x4xf32, #tpu.memory_space<vmem>>, vector<1x4xf32>
    %37 = arith.extui %22 : vector<8x4xi1> to vector<8x4xi32>
    %38 = arith.sitofp %37 : vector<8x4xi32> to vector<8x4xf32>
    %cst_13 = arith.constant dense<0.000000e+00> : vector<4xf32>
    %39 = vector.multi_reduction <add>, %38, %cst_13 [0] : vector<8x4xf32> to vector<4xf32>
    %40 = vector.shape_cast %39 : vector<4xf32> to vector<1x4xf32>
    %41 = arith.addf %36, %40 : vector<1x4xf32>
    %c0_14 = arith.constant 0 : index
    %c0_15 = arith.constant 0 : index
    %42 = vector.load %arg5[%c0_14, %c0_15] : memref<1x4xf32, #tpu.memory_space<vmem>>, vector<1x4xf32>
    tpu.vector_store %arg5[%c0_14, %c0_15], %41 {strides = array<i32>} : memref<1x4xf32, #tpu.memory_space<vmem>>, vector<1x4xf32>,
    %c0_16 = arith.constant 0 : index
    %c0_17 = arith.constant 0 : index
    %43 = vector.load %arg6[%c0_16, %c0_17] : memref<1x4xf32, #tpu.memory_space<vmem>>, vector<1x4xf32>
    %44 = arith.extui %25 : vector<8x4xi1> to vector<8x4xi32>
    %45 = arith.sitofp %44 : vector<8x4xi32> to vector<8x4xf32>
    %cst_18 = arith.constant dense<0.000000e+00> : vector<4xf32>
    %46 = vector.multi_reduction <add>, %45, %cst_18 [0] : vector<8x4xf32> to vector<4xf32>
    %47 = vector.shape_cast %46 : vector<4xf32> to vector<1x4xf32>
    %48 = arith.addf %43, %47 : vector<1x4xf32>
    %c0_19 = arith.constant 0 : index
    %c0_20 = arith.constant 0 : index
    %49 = vector.load %arg6[%c0_19, %c0_20] : memref<1x4xf32, #tpu.memory_space<vmem>>, vector<1x4xf32>
    tpu.vector_store %arg6[%c0_19, %c0_20], %48 {strides = array<i32>} : memref<1x4xf32, #tpu.memory_space<vmem>>, vector<1x4xf32>,
    %c0_i32_21 = arith.constant 0 : i32
    %50 = arith.cmpi eq, %arg0, %c0_i32_21 : i32
    %51 = arith.extui %50 : i1 to i32
    %c0_i32_22 = arith.constant 0 : i32
    %52 = arith.cmpi ne, %51, %c0_i32_22 : i32
    scf.if %52 {
      %c0_23 = arith.constant 0 : index
      %c0_24 = arith.constant 0 : index
      %53 = vector.load %arg4[%c0_23, %c0_24] : memref<1x4xf32, #tpu.memory_space<vmem>>, vector<1x4xf32>
      %c0_25 = arith.constant 0 : index
      %c0_26 = arith.constant 0 : index
      %54 = vector.load %arg5[%c0_25, %c0_26] : memref<1x4xf32, #tpu.memory_space<vmem>>, vector<1x4xf32>
      %55 = arith.subf %54, %53 : vector<1x4xf32>
      %c0_27 = arith.constant 0 : index
      %c0_28 = arith.constant 0 : index
      %56 = vector.load %arg6[%c0_27, %c0_28] : memref<1x4xf32, #tpu.memory_space<vmem>>, vector<1x4xf32>
      %57 = arith.subf %56, %53 : vector<1x4xf32>
      %58 = arith.addf %53, %55 : vector<1x4xf32>
      %cst_29 = arith.constant 1.000000e-07 : f32
      %59 = vector.broadcast %cst_29 : f32 to vector<1x4xf32>
      %60 = arith.addf %58, %59 : vector<1x4xf32>
      %61 = arith.divf %53, %60 : vector<1x4xf32>
      %62 = arith.addf %53, %57 : vector<1x4xf32>
      %cst_30 = arith.constant 1.000000e-07 : f32
      %63 = vector.broadcast %cst_30 : f32 to vector<1x4xf32>
      %64 = arith.addf %62, %63 : vector<1x4xf32>
      %65 = arith.divf %53, %64 : vector<1x4xf32>
      %cst_31 = arith.constant 2.000000e+00 : f32
      %66 = vector.broadcast %cst_31 : f32 to vector<1x4xf32>
      %67 = arith.mulf %66, %61 : vector<1x4xf32>
      %68 = arith.mulf %67, %65 : vector<1x4xf32>
      %69 = arith.addf %61, %65 : vector<1x4xf32>
      %cst_32 = arith.constant 1.000000e-07 : f32
      %70 = vector.broadcast %cst_32 : f32 to vector<1x4xf32>
      %71 = arith.addf %69, %70 : vector<1x4xf32>
      %72 = arith.divf %68, %71 : vector<1x4xf32>
      %cst_33 = arith.constant dense<0.000000e+00> : vector<1xf32>
      %73 = vector.multi_reduction <add>, %72, %cst_33 [1] : vector<1x4xf32> to vector<1xf32>
      %74 = vector.shape_cast %73 : vector<1xf32> to vector<1x1xf32>
      %cst_34 = arith.constant 4.000000e+00 : f32
      %75 = vector.broadcast %cst_34 : f32 to vector<1x1xf32>
      %76 = arith.divf %74, %75 : vector<1x1xf32>
      %c0_35 = arith.constant 0 : index
      %c0_36 = arith.constant 0 : index
      %77 = vector.load %arg3[%c0_35, %c0_36] : memref<1x1xf32, #tpu.memory_space<vmem>>, vector<1x1xf32>
      tpu.vector_store %arg3[%c0_35, %c0_36], %76 {strides = array<i32>} : memref<1x1xf32, #tpu.memory_space<vmem>>, vector<1x1xf32>,
    } else {
    }
    return
  }
  func.func @transform_0(%arg0: i32) -> (i32, i32) {
    %c0_i32 = arith.constant 0 : i32
    %c0_i32_0 = arith.constant 0 : i32
    return %arg0, %c0_i32 : i32, i32
  }
  func.func @transform_1(%arg0: i32) -> (i32, i32) {
    %c0_i32 = arith.constant 0 : i32
    %c0_i32_0 = arith.constant 0 : i32
    return %arg0, %c0_i32 : i32, i32
  }
  func.func @transform_2(%arg0: i32) -> (i32, i32) {
    %c0_i32 = arith.constant 0 : i32
    %c0_i32_0 = arith.constant 0 : i32
    %c0_i32_1 = arith.constant 0 : i32
    return %c0_i32, %c0_i32_0 : i32, i32
  }
}

</mosaic_0001>

<bundles_post_ra>
// kernel: tpu_custom_call.1
= control target key start
LH: loop header
LB: loop body
LE: loop exit
PB: predicated region body
PF: predicated region fallthrough
CT: control target
= control target key end

     0   :  { %vm30_vm0 = vcmask 31744   ;;  %s233_s0 = inlined_call_operand.vmem [shape: f32[8,4], index: 0, kind: input, shape index: {}]   ;;  %s234_s1 = inlined_call_operand.vmem [shape: s32[8,1], index: 1, kind: input, shape index: {}]   ;;  %s235_s2 = inlined_call_operand.hbm [shape: f32[1,1], index: 2, kind: output, shape index: {}]  }
   0x1   :  { %v20_v0 = vld [vmem:[%s233_s0] sm:$0xff] }
   0x2   :  { %7 = vsyncpa [#allocation6], 0  ;;  %v31_v1 = vsel %vm30_vm0, %v20_v0, -inf  ;;  %v24_v2 = vlaneseq  ;;  %v183_v13 = vmov 0   ;;  %v21_v14 = vld [vmem:[%s234_s1] sm:$0xff]  ;;  %vm16_vm3 = vcmask 24576  }
   0x3   :  { %32 = vmax.xlane.f32.xlu0 %v31_v1  ;;  %151 = vset.pattern.permute.xlu1 %v183_v13  ;;  %v184_v15 = vmov 0.0   ;;  %s185_s1 = smov [#allocation5]   ;;  %vm129_vm9 = vcmask 0  }
   0x4   :  { %v25_v3 = vand.u32 127, %v24_v2  ;;  %152 = vset.pattern.permute.xlu0 %v183_v13  ;;  %18 = vst.msk [vmem:[#allocation3] sm:$0x1] %vm16_vm3, %v184_v15  ;;  %19 = vst.msk [vmem:[#allocation4] sm:$0x1] %vm16_vm3, %v184_v15  ;;  %s137_s12 = sshll.u32 %s185_s1, 4  ;;  %s138_s12 = int_to_ptr.vmem [resolvable:$true] %s137_s12 }
   0x5   :  { %17 = vst.msk [vmem:[#allocation2] sm:$0x1] %vm16_vm3, %v184_v15  ;;  %s159_s13 = scalar_lea.vmem %s138_s12, 16  ;;  %s163_s14 = scalar_lea.vmem %s138_s12, 32 }
   0x6   :  { %p160_p0 = scmp.ne.s32.totalorder %s138_s12, %s159_s13  ;;  %p164_p1 = scmp.lt.s32.totalorder %s138_s12, %s138_s12 }
   0x7   :  { %p165_p2 = scmp.lt.s32.totalorder %s163_s14, %s159_s13 }
   0x9   :  { %p166_p3 = por %p165_p2, %p164_p1 }
   0xb   :  { %v90_v35 = vld [vmem:[#allocation4] sm:$0x1]  ;;  %v78_v40 = vld [vmem:[#allocation3] sm:$0x1]  ;;  %p167_p4 = pnand %p166_p3, %p160_p0 }
   0xc   :  { %v65_v51 = vld [vmem:[#allocation2] sm:$0x1] }
  0x90   :  { %v33_v4 = vpop.xlane.xlu0 %32 }
  0x91   :  { %vm34_vm1 = vcmp.eq.f32.partialorder %v20_v0, %v33_v4 }
  0x92   :  { %v35_v5 = vsel %vm34_vm1, %v25_v3, 4 }
  0x93   :  { %v36_v6 = vsel %vm30_vm0, %v35_v5, 2147483647 }
  0x94   :  { %v38_v7 = vshra.s32 %v36_v6, 16  ;;  %v37_v9 = vand.u32 65535, %v36_v6 }
  0x96   :  { %v40_v8 = vcvt.s32.f32 %v38_v7  ;;  %v39_v11 = vcvt.s32.f32 %v37_v9 }
  0x98   :  { %41 = vmin.xlane.f32.xlu0 %v40_v8 }
  0xae   :  { %54 = vperm.xlu0 %152, %v21_v14  }
 0x125   :  { %v42_v10 = vpop.xlane.xlu0 %41 }
 0x126   :  { %vm43_vm2 = vcmp.eq.f32.partialorder %v40_v8, %v42_v10  ;;  %v48_v16 = vcvt.f32.s32 %v42_v10 }
 0x127   :  { %v44_v12 = vsel %vm43_vm2, %v39_v11, inf }
 0x128   :  { %45 = vmin.xlane.f32.xlu1 %v44_v12  ;;  %v49_v18 = vshll.u32 %v48_v16, 16 }
 0x12d   :  { %v55_v20 = vpop.permute.xlu0 %54 }
 0x12e   :  { %vm56_vm4 = vcmp.eq.s32.totalorder %v55_v20, %v25_v3 }
 0x12f   :  { %v147_v22 = vsel %vm56_vm4, 1.0, %v184_v15 }
 0x130   :  { %v93_v23 = vsel %vm30_vm0, %v147_v22, 0.0 }
 0x131   :  { %v94_v24 = vrot.slane %v93_v23, 4 }
 0x133   :  { %v95_v27 = vadd.f32 %v94_v24, %v93_v23 }
 0x135   :  { %v96_v30 = vrot.slane %v95_v27, 2 }
 0x137   :  { %v97_v32 = vadd.f32 %v96_v30, %v95_v27 }
 0x139   :  { %v98_v34 = vrot.slane %v97_v32, 1 }
 0x13b   :  { %v99_v37 = vadd.f32 %v98_v34, %v97_v32 }
 0x13d   :  { %v100_v39 = vadd.f32 %v99_v37, %v90_v35 }
 0x13f   :  { %101 = vst.msk [vmem:[#allocation4] sm:$0x1] %vm16_vm3, %v100_v39 }
 0x146   :  { %v108_v56 = vld [vmem:[#allocation4] sm:$0x1] }
 0x1b5   :  { %v46_v17 = vpop.xlane.xlu1 %45 }
 0x1b6   :  { %v47_v19 = vcvt.f32.s32 %v46_v17 }
 0x1b8   :  { %v50_v21 = vadd.s32 %v49_v18, %v47_v19 }
 0x1ba   :  { %vm58_vm5 = vcmp.eq.s32.totalorder %v50_v21, %v21_v14  ;;  %vm51_vm6 = vcmp.eq.s32.totalorder %v50_v21, %v25_v3 }
 0x1bb   :  { %v59_v25 = vsel %vm58_vm5, 1, %v183_v13  ;;  %v146_v26 = vsel %vm51_vm6, 1.0, %v184_v15 }
 0x1bc   :  { %61 = vperm.xlu1 %151, %v59_v25   ;;  %v81_v28 = vsel %vm30_vm0, %v146_v26, 0.0 }
 0x1bd   :  { %v82_v29 = vrot.slane %v81_v28, 4 }
 0x1bf   :  { %v83_v31 = vadd.f32 %v82_v29, %v81_v28 }
 0x1c1   :  { %v84_v33 = vrot.slane %v83_v31, 2 }
 0x1c3   :  { %v85_v36 = vadd.f32 %v84_v33, %v83_v31 }
 0x1c5   :  { %v86_v38 = vrot.slane %v85_v36, 1 }
 0x1c7   :  { %v87_v41 = vadd.f32 %v86_v38, %v85_v36 }
 0x1c9   :  { %v88_v42 = vadd.f32 %v87_v41, %v78_v40 }
 0x1cb   :  { %89 = vst.msk [vmem:[#allocation3] sm:$0x1] %vm16_vm3, %v88_v42 }
 0x1d2   :  { %v106_v55 = vld [vmem:[#allocation3] sm:$0x1] }
 0x23b   :  { %v62_v43 = vpop.permute.xlu1 %61 }
 0x23c   :  { %vm63_vm7 = vcmp.eq.s32.totalorder %v62_v43, 1 }
 0x23d   :  { %vm64_vm8 = vmand %vm51_vm6, %vm63_vm7 }
 0x23e   :  { %v145_v44 = vsel %vm64_vm8, 1.0, %v184_v15 }
 0x23f   :  { %v68_v45 = vsel %vm30_vm0, %v145_v44, 0.0 }
 0x240   :  { %v69_v46 = vrot.slane %v68_v45, 4 }
 0x242   :  { %v70_v47 = vadd.f32 %v69_v46, %v68_v45 }
 0x244   :  { %v71_v48 = vrot.slane %v70_v47, 2 }
 0x246   :  { %v72_v49 = vadd.f32 %v71_v48, %v70_v47 }
 0x248   :  { %v73_v50 = vrot.slane %v72_v49, 1 }
 0x24a   :  { %v74_v52 = vadd.f32 %v73_v50, %v72_v49 }
 0x24c   :  { %v75_v53 = vadd.f32 %v74_v52, %v65_v51 }
 0x24e   :  { %77 = vst.msk [vmem:[#allocation2] sm:$0x1] %vm16_vm3, %v75_v53 }
 0x255   :  { %v105_v54 = vld [vmem:[#allocation2] sm:$0x1] }
 0x256   :  { %v107_v57 = vsub.f32 %v106_v55, %v105_v54  ;;  %v109_v58 = vsub.f32 %v108_v56, %v105_v54 }
 0x258   :  { %v110_v59 = vadd.f32 %v107_v57, %v105_v54  ;;  %v114_v60 = vadd.f32 %v109_v58, %v105_v54 }
 0x25a   :  { %v111_v61 = vadd.f32 1e-07, %v110_v59  ;;  %v115_v62 = vadd.f32 1e-07, %v114_v60 }
 0x25c   :  { %153 = vrcp.f32 %v111_v61 }
 0x25d   :  { %155 = vrcp.f32 %v115_v62 }
 0x266   :  { %v154_v63 = vpop.eup %153 }
 0x267   :  { %v156_v0 = vpop.eup %155  ;;  %v113_v1 = vmul.f32 %v154_v63, %v105_v54 }
 0x268   :  { %v117_v2 = vmul.f32 %v156_v0, %v105_v54 }
 0x269   :  { %v118_v5 = vmul.f32 2.0, %v113_v1 }
 0x26a   :  { %v120_v3 = vadd.f32 %v117_v2, %v113_v1 }
 0x26b   :  { %v119_v6 = vmul.f32 %v118_v5, %v117_v2 }
 0x26c   :  { %v121_v4 = vadd.f32 1e-07, %v120_v3 }
 0x26e   :  { %157 = vrcp.f32 %v121_v4 }
 0x278   :  { %v158_v7 = vpop.eup %157 }
 0x279   :  { %v123_v8 = vmul.f32 %v158_v7, %v119_v6 }
 0x27b   :  { %v124_v9 = vsel %vm16_vm3, %v123_v8, 0.0 }
 0x27c   :  { %125 = vadd.xlane.f32.xlu1 %v124_v9 }
 0x309   :  { %v126_v10 = vpop.xlane.xlu1 %125 }
 0x30a   :  { %v128_v11 = vmul.f32 0.25, %v126_v10 }
 0x30c   :  { %130 = vst.msk [vmem:[#allocation5] sm:$0x1] %vm129_vm9, %v128_v11 }
 0x30d   :  { %170 = shalt.err (!%p167_p4)
}
 0x30e   :  { %s171_s17 = scalar_lea.hbm %s235_s2, 16 }
 0x30f   :  { %p172_p5 = scmp.ne.s32.totalorder %s235_s2, %s171_s17  ;;  %p175_p6 = scmp.lt.u32.totalorder %s171_s17, %s235_s2 }
 0x311   :  { %p177_p7 = pnand %p175_p6, %p172_p5 }
 0x313   :  { %180 = shalt.err (!%p177_p7)
}
 0x314   :  { %140 = dma.vmem_to_hbm [thread:$0]  %s138_s12, 16, %s235_s2, [#allocation6]  }
 0x315   :  { %181 = dma.done.wait [#allocation6], 16  }
 0x316   :  { %182 = vsyncadd [#allocation6], 4294967280 }
 0x317   :  { %144 = vsyncpa [#allocation6], 1 }

</bundles_post_ra>
